<compile_context>
chip_gen: v6e
topology: v6e:2x2x1
jax: 0.10.0
libtpu: 0.0.40
codegen_flags: <defaults>
</compile_context>

<pallas_src>
import functools

import numpy as np
import jax
import jax.numpy as jnp
from jax import lax
from jax.experimental import pallas as pl
from jax.experimental.pallas import tpu as pltpu


def _round_up(x, m):
    return ((x + m - 1) // m) * m


def _sc_partials_kernel(x_ref, y_ref, d2_ref, y2_ref, *, m, n, slab):
    """Per-block partial sums of (y-x)^2 and y^2, folded to (8, 128).

    x_ref, y_ref : (tm, lanes) VMEM tiles of the magnitudes (input dtype).
    d2_ref, y2_ref : (1, 8, 128) f32 per-block partial-sum outputs.
    """
    tm, lanes = x_ref.shape
    nslabs = tm // slab
    row_base = pl.program_id(0) * tm

    # Masks for the row tail (last grid block) and the lane tail (bins < lanes).
    lane_ids = lax.broadcasted_iota(jnp.int32, (slab, lanes), 1)
    sub_ids = lax.broadcasted_iota(jnp.int32, (slab, lanes), 0)
    lane_ok = lane_ids < n

    def body(r, carry):
        acc_d2, acc_y2 = carry
        r0 = pl.multiple_of(r * slab, slab)
        x = x_ref[pl.ds(r0, slab), :].astype(jnp.float32)
        y = y_ref[pl.ds(r0, slab), :].astype(jnp.float32)
        valid = jnp.logical_and(lane_ok, (row_base + r0 + sub_ids) < m)
        d = y - x
        d2 = jnp.where(valid, d * d, 0.0)
        ysq = jnp.where(valid, y * y, 0.0)
        # Fold sublanes -> 8 and lanes -> 128 with vreg-wise VPU adds only
        # (no XLU); the DMA is the bottleneck so these adds are free filler.
        for s in range(slab // 8):
            for k in range(lanes // 128):
                acc_d2 = acc_d2 + d2[8 * s:8 * (s + 1), 128 * k:128 * (k + 1)]
                acc_y2 = acc_y2 + ysq[8 * s:8 * (s + 1), 128 * k:128 * (k + 1)]
        return acc_d2, acc_y2

    zero = jnp.zeros((8, 128), jnp.float32)
    acc_d2, acc_y2 = lax.fori_loop(0, nslabs, body, (zero, zero))
    d2_ref[0] = acc_d2
    y2_ref[0] = acc_y2


def _pick_tile(m, n, itemsize, slab):
    """VMEM-budget-adaptive row tile (tm) and lane-padded width (lanes)."""
    lanes = _round_up(n, 128)
    rows = _round_up(m, slab)
    budget = 32 << 20                        # 2 inputs x 2 pipeline buffers
    tm = budget // (4 * lanes * itemsize)
    tm = max(slab, (tm // slab) * slab)
    tm = min(tm, rows)
    # If everything fits in one block but the input is sizeable, split in two
    # so both TensorCores (v7x) can work on the "parallel" grid axis.
    if tm == rows and rows >= 2 * slab and rows * lanes * itemsize >= (4 << 20):
        tm = _round_up((rows + 1) // 2, slab)
    return tm, lanes


def spectral_convergence_loss(x_mag, y_mag, *, force_pallas=False):
    """||y_mag - x_mag||_F / ||y_mag||_F  (matches torch.norm(..., p='fro'))."""
    assert x_mag.shape == y_mag.shape
    x = jnp.asarray(x_mag)
    y = jnp.asarray(y_mag)
    if (x.dtype != y.dtype
            or x.dtype not in (jnp.float32, jnp.bfloat16, jnp.float16)):
        x = x.astype(jnp.float32)
        y = y.astype(jnp.float32)

    n = x.shape[-1] if x.ndim >= 1 else 1
    x2 = x.reshape(-1, n)
    y2 = y.reshape(-1, n)
    m = x2.shape[0]
    itemsize = x2.dtype.itemsize

    # Small-input fast path: kernel launch overhead dwarfs the math.
    if not force_pallas and m * n * itemsize < (1 << 20):
        xf = x2.astype(jnp.float32)
        yf = y2.astype(jnp.float32)
        d = yf - xf
        return jnp.sqrt(jnp.sum(d * d)) / jnp.sqrt(jnp.sum(yf * yf))

    slab = 8 * max(1, 4 // itemsize)         # 8 rows (f32), 16 rows (bf16/f16)
    tm, lanes = _pick_tile(m, n, itemsize, slab)
    nblocks = pl.cdiv(m, tm)

    kernel = functools.partial(_sc_partials_kernel, m=m, n=n, slab=slab)
    d2p, y2p = pl.pallas_call(
        kernel,
        out_shape=(jax.ShapeDtypeStruct((nblocks, 8, 128), jnp.float32),
                   jax.ShapeDtypeStruct((nblocks, 8, 128), jnp.float32)),
        grid=(nblocks,),
        in_specs=[pl.BlockSpec((tm, lanes), lambda i: (i, 0)),
                  pl.BlockSpec((tm, lanes), lambda i: (i, 0))],
        out_specs=(pl.BlockSpec((1, 8, 128), lambda i: (i, 0, 0)),
                   pl.BlockSpec((1, 8, 128), lambda i: (i, 0, 0))),
        compiler_params=pltpu.CompilerParams(
            dimension_semantics=("parallel",),   # no cross-step dependency
            vmem_limit_bytes=40 << 20),          # safe on v7x's 64 MiB VMEM
    )(x2, y2)

    # Tiny final reduction (nblocks * 8 * 128 elements) + sqrt/divide in JAX.
    d2_sum = jnp.sum(d2p)
    y2_sum = jnp.sum(y2p)
    return jnp.sqrt(d2_sum) / jnp.sqrt(y2_sum)


if __name__ == "__main__":
    key = jax.random.PRNGKey(0)
    kx, ky = jax.random.split(key)

    # Small magnitude-spectrogram-like inputs: (batch=2, frames=36, freq_bins=513)
    B, FRAMES, BINS = 2, 36, 513
    x_mag = jnp.abs(jax.random.normal(kx, (B, FRAMES, BINS), dtype=jnp.float32))
    y_mag = jnp.abs(x_mag + 0.1 * jax.random.normal(ky, (B, FRAMES, BINS),
                                                    dtype=jnp.float32))

    loss_fn = jax.jit(spectral_convergence_loss, static_argnames=("force_pallas",))

    # Force the Pallas path so the kernel itself is exercised on this small input.
    loss = jax.block_until_ready(loss_fn(x_mag, y_mag, force_pallas=True))

    # Pure-JAX reference (same math as torch.norm(y-x,'fro')/torch.norm(y,'fro')).
    ref = jnp.linalg.norm((y_mag - x_mag).reshape(-1)) / jnp.linalg.norm(
        y_mag.reshape(-1))
    np.testing.assert_allclose(np.asarray(loss), np.asarray(ref),
                               rtol=1e-5, atol=1e-6)

    # The default call takes the small-input jnp fast path; check it agrees too.
    loss_fast = jax.block_until_ready(loss_fn(x_mag, y_mag))
    np.testing.assert_allclose(np.asarray(loss_fast), np.asarray(ref),
                               rtol=1e-5, atol=1e-6)

    print("KERNEL_OK")
</pallas_src>

<mosaic_0001>
module attributes {stable_mosaic.version = 11 : i64} {
  func.func @_sc_partials_kernel(%arg0: i32, %arg1: memref<72x640xf32, #tpu.memory_space<vmem>>, %arg2: memref<72x640xf32, #tpu.memory_space<vmem>>, %arg3: memref<1x8x128xf32, #tpu.memory_space<vmem>>, %arg4: memref<1x8x128xf32, #tpu.memory_space<vmem>>) attributes {dimension_semantics = [#tpu.dimension_semantics<parallel>], iteration_bounds = array<i64: 1>, scalar_prefetch = 0 : i64, scratch_operands = 0 : i64, tpu.core_type = #tpu.core_type<tc>, window_params = [{transform_indices = @transform_0, window_bounds = array<i64: 72, 640>}, {transform_indices = @transform_1, window_bounds = array<i64: 72, 640>}, {transform_indices = @transform_2, window_bounds = array<i64: 1, 8, 128>}, {transform_indices = @transform_3, window_bounds = array<i64: 1, 8, 128>}]} {
    %c72_i32 = arith.constant 72 : i32
    %0 = arith.muli %arg0, %c72_i32 : i32
    %1 = tpu.iota {dimensions = array<i32: 1>} : vector<8x640xi32>
    %2 = tpu.iota {dimensions = array<i32: 0>} : vector<8x640xi32>
    %c513_i32 = arith.constant 513 : i32
    %3 = vector.broadcast %c513_i32 : i32 to vector<8x640xi32>
    %4 = arith.cmpi slt, %1, %3 : vector<8x640xi32>
    %cst = arith.constant 0.000000e+00 : f32
    %5 = vector.broadcast %cst : f32 to vector<8x128xf32>
    %c0_i32 = arith.constant 0 : i32
    %c9_i32 = arith.constant 9 : i32
    %6 = arith.addi %c0_i32, %c9_i32 : i32
    %c1_i32 = arith.constant 1 : i32
    %7:2 = scf.for %arg5 = %c0_i32 to %6 step %c1_i32 iter_args(%arg6 = %5, %arg7 = %5) -> (vector<8x128xf32>, vector<8x128xf32>)  : i32 {
      %c8_i32 = arith.constant 8 : i32
      %14 = arith.muli %arg5, %c8_i32 : i32
      %15 = tpu.assume_multiple %14, 8 : i32
      %16 = arith.index_cast %15 : i32 to index
      %c0_6 = arith.constant 0 : index
      %17 = vector.load %arg1[%16, %c0_6] : memref<72x640xf32, #tpu.memory_space<vmem>>, vector<8x640xf32>
      %18 = arith.index_cast %15 : i32 to index
      %c0_7 = arith.constant 0 : index
      %19 = vector.load %arg2[%18, %c0_7] : memref<72x640xf32, #tpu.memory_space<vmem>>, vector<8x640xf32>
      %20 = arith.addi %0, %15 : i32
      %21 = vector.broadcast %20 : i32 to vector<8x640xi32>
      %22 = arith.addi %21, %2 : vector<8x640xi32>
      %c72_i32_8 = arith.constant 72 : i32
      %23 = vector.broadcast %c72_i32_8 : i32 to vector<8x640xi32>
      %24 = arith.cmpi slt, %22, %23 : vector<8x640xi32>
      %25 = arith.andi %4, %24 : vector<8x640xi1>
      %26 = arith.subf %19, %17 : vector<8x640xf32>
      %27 = arith.mulf %26, %26 : vector<8x640xf32>
      %cst_9 = arith.constant 0.000000e+00 : f32
      %28 = vector.broadcast %cst_9 : f32 to vector<8x640xf32>
      %29 = arith.select %25, %27, %28 : vector<8x640xi1>, vector<8x640xf32>
      %30 = arith.mulf %19, %19 : vector<8x640xf32>
      %cst_10 = arith.constant 0.000000e+00 : f32
      %31 = vector.broadcast %cst_10 : f32 to vector<8x640xf32>
      %32 = arith.select %25, %30, %31 : vector<8x640xi1>, vector<8x640xf32>
      %33 = vector.extract_strided_slice %29 {offsets = [0, 0], sizes = [8, 128], strides = [1, 1]} : vector<8x640xf32> to vector<8x128xf32>
      %34 = arith.addf %arg6, %33 : vector<8x128xf32>
      %35 = vector.extract_strided_slice %32 {offsets = [0, 0], sizes = [8, 128], strides = [1, 1]} : vector<8x640xf32> to vector<8x128xf32>
      %36 = arith.addf %arg7, %35 : vector<8x128xf32>
      %37 = vector.extract_strided_slice %29 {offsets = [0, 128], sizes = [8, 128], strides = [1, 1]} : vector<8x640xf32> to vector<8x128xf32>
      %38 = arith.addf %34, %37 : vector<8x128xf32>
      %39 = vector.extract_strided_slice %32 {offsets = [0, 128], sizes = [8, 128], strides = [1, 1]} : vector<8x640xf32> to vector<8x128xf32>
      %40 = arith.addf %36, %39 : vector<8x128xf32>
      %41 = vector.extract_strided_slice %29 {offsets = [0, 256], sizes = [8, 128], strides = [1, 1]} : vector<8x640xf32> to vector<8x128xf32>
      %42 = arith.addf %38, %41 : vector<8x128xf32>
      %43 = vector.extract_strided_slice %32 {offsets = [0, 256], sizes = [8, 128], strides = [1, 1]} : vector<8x640xf32> to vector<8x128xf32>
      %44 = arith.addf %40, %43 : vector<8x128xf32>
      %45 = vector.extract_strided_slice %29 {offsets = [0, 384], sizes = [8, 128], strides = [1, 1]} : vector<8x640xf32> to vector<8x128xf32>
      %46 = arith.addf %42, %45 : vector<8x128xf32>
      %47 = vector.extract_strided_slice %32 {offsets = [0, 384], sizes = [8, 128], strides = [1, 1]} : vector<8x640xf32> to vector<8x128xf32>
      %48 = arith.addf %44, %47 : vector<8x128xf32>
      %49 = vector.extract_strided_slice %29 {offsets = [0, 512], sizes = [8, 128], strides = [1, 1]} : vector<8x640xf32> to vector<8x128xf32>
      %50 = arith.addf %46, %49 : vector<8x128xf32>
      %51 = vector.extract_strided_slice %32 {offsets = [0, 512], sizes = [8, 128], strides = [1, 1]} : vector<8x640xf32> to vector<8x128xf32>
      %52 = arith.addf %48, %51 : vector<8x128xf32>
      scf.yield %50, %52 : vector<8x128xf32>, vector<8x128xf32>
    }
    %c9_i32_0 = arith.constant 9 : i32
    %c0 = arith.constant 0 : index
    %c0_1 = arith.constant 0 : index
    %c0_2 = arith.constant 0 : index
    %8 = vector.load %arg3[%c0, %c0_1, %c0_2] : memref<1x8x128xf32, #tpu.memory_space<vmem>>, vector<1x8x128xf32>
    %9 = vector.shape_cast %8 : vector<1x8x128xf32> to vector<8x128xf32>
    %10 = vector.shape_cast %7#0 : vector<8x128xf32> to vector<1x8x128xf32>
    tpu.vector_store %arg3[%c0, %c0_1, %c0_2], %10 {strides = array<i32>} : memref<1x8x128xf32, #tpu.memory_space<vmem>>, vector<1x8x128xf32>,
    %c0_3 = arith.constant 0 : index
    %c0_4 = arith.constant 0 : index
    %c0_5 = arith.constant 0 : index
    %11 = vector.load %arg4[%c0_3, %c0_4, %c0_5] : memref<1x8x128xf32, #tpu.memory_space<vmem>>, vector<1x8x128xf32>
    %12 = vector.shape_cast %11 : vector<1x8x128xf32> to vector<8x128xf32>
    %13 = vector.shape_cast %7#1 : vector<8x128xf32> to vector<1x8x128xf32>
    tpu.vector_store %arg4[%c0_3, %c0_4, %c0_5], %13 {strides = array<i32>} : memref<1x8x128xf32, #tpu.memory_space<vmem>>, vector<1x8x128xf32>,
    return
  }
  func.func @transform_0(%arg0: i32) -> (i32, i32) {
    %c0_i32 = arith.constant 0 : i32
    %c0_i32_0 = arith.constant 0 : i32
    return %arg0, %c0_i32 : i32, i32
  }
  func.func @transform_1(%arg0: i32) -> (i32, i32) {
    %c0_i32 = arith.constant 0 : i32
    %c0_i32_0 = arith.constant 0 : i32
    return %arg0, %c0_i32 : i32, i32
  }
  func.func @transform_2(%arg0: i32) -> (i32, i32, i32) {
    %c0_i32 = arith.constant 0 : i32
    %c0_i32_0 = arith.constant 0 : i32
    %c0_i32_1 = arith.constant 0 : i32
    return %arg0, %c0_i32, %c0_i32_0 : i32, i32, i32
  }
  func.func @transform_3(%arg0: i32) -> (i32, i32, i32) {
    %c0_i32 = arith.constant 0 : i32
    %c0_i32_0 = arith.constant 0 : i32
    %c0_i32_1 = arith.constant 0 : i32
    return %arg0, %c0_i32, %c0_i32_0 : i32, i32, i32
  }
}

</mosaic_0001>

<bundles_post_ra>
// kernel: spectral_convergence_loss.1
= control target key start
LH: loop header
LB: loop body
LE: loop exit
PB: predicated region body
PF: predicated region fallthrough
CT: control target
= control target key end

     0   :  { %v14_v0 = vlaneseq  ;;  %v200_v4 = vmov 0.0   ;;  %v202_v5 = vmov 0.0   ;;  %s204_s12 = smov 0   ;;  %s243_s0 = inlined_call_operand.vmem [shape: f32[72,513], index: 0, kind: input, shape index: {}]   ;;  %s244_s1 = inlined_call_operand.vmem [shape: f32[72,513], index: 1, kind: input, shape index: {}]   ;;  %s245_s2 = inlined_call_operand.vmem [shape: f32[1,8,128], index: 2, kind: output, shape index: {0}]   ;;  %s246_s3 = inlined_call_operand.vmem [shape: f32[1,8,128], index: 3, kind: output, shape index: {1}]  }
   0x2   :  { %v15_v1 = vand.u32 127, %v14_v0  ;;  %v195_v2 = vshrl.u32 %v14_v0, 7 }
   0x4   :  { %v197_v3 = vadd.s32 512, %v15_v1 }
   0x6   :  { %vm26_vm0 = vcmp.lt.s32.totalorder %v197_v3, 513 }
   0x7 LB: > { %s122_s13 = sshll.u32 %s173_s12, 3  ;;  %s32_s12 = sadd.s32 1, %s173_s12   ;;  %s173_s12 = sphi %s204_s12, %s32_s12   ;;  %v169_v5 = vphi %v202_v5, %v248_v5   ;;  %v165_v4 = vphi %v200_v4, %v247_v4  }
   0x8   : > { %s36_s14 = sshra.s32 %s122_s13, 3  ;;  %v54_v6 = vstv %s122_s13  ;;  %p29_p0 = scmp.ge.s32.totalorder %s32_s12, 9  }
   0x9   : > { %s125_s15 = smul.u32 40, %s36_s14  ;;  %v55_v7 = vadd.s32 %v54_v6, %v195_v2 }
   0xb   : > { %s40_s18 = scalar_lea.vmem %s243_s0, %s125_s15  ;;  %s47_s21 = scalar_lea.vmem %s244_s1, %s125_s15  ;;  %vm56_vm1 = vcmp.lt.s32.totalorder %v55_v7, 72 }
   0xc   : > { %v41_v8 = vld [vmem:[%s40_s18] sm:$0xff]  ;;  %v42_v9 = vld [vmem:[%s40_s18 + $0x8] sm:$0xff]  ;;  %v43_v10 = vld [vmem:[%s40_s18 + $0x10] sm:$0xff] }
   0xd   : > { %v44_v11 = vld [vmem:[%s40_s18 + $0x18] sm:$0xff]  ;;  %v45_v12 = vld [vmem:[%s40_s18 + $0x20] sm:$0xff]  ;;  %v49_v14 = vld [vmem:[%s47_s21 + $0x8] sm:$0xff] }
   0xe   : > { %v48_v13 = vld [vmem:[%s47_s21] sm:$0xff]  ;;  %v50_v15 = vld [vmem:[%s47_s21 + $0x10] sm:$0xff]  ;;  %v51_v16 = vld [vmem:[%s47_s21 + $0x18] sm:$0xff]  ;;  %v63_v20 = vsub.f32 %v49_v14, %v42_v9  ;;  %v78_v24 = vmul.f32 %v49_v14, %v49_v14 }
   0xf   : > { %v62_v17 = vsub.f32 %v48_v13, %v41_v8  ;;  %v77_v18 = vmul.f32 %v48_v13, %v48_v13  ;;  %v52_v19 = vld [vmem:[%s47_s21 + $0x20] sm:$0xff]  ;;  %v64_v21 = vsub.f32 %v50_v15, %v43_v10  ;;  %v65_v22 = vsub.f32 %v51_v16, %v44_v11  ;;  %vm61_vm2 = vmand %vm26_vm0, %vm56_vm1 }
  0x10   : > { %v66_v25 = vsub.f32 %v52_v19, %v45_v12  ;;  %v68_v26 = vmul.f32 %v63_v20, %v63_v20  ;;  %v79_v29 = vmul.f32 %v50_v15, %v50_v15  ;;  %v80_v33 = vmul.f32 %v51_v16, %v51_v16 }
  0x11   : > { %v67_v23 = vmul.f32 %v62_v17, %v62_v17  ;;  %v69_v27 = vmul.f32 %v64_v21, %v64_v21  ;;  %v82_v30 = vsel %vm56_vm1, %v77_v18, 0.0  ;;  %v70_v31 = vmul.f32 %v65_v22, %v65_v22 }
  0x12   : > { %v73_v32 = vsel %vm56_vm1, %v68_v26, 0.0  ;;  %v83_v34 = vsel %vm56_vm1, %v78_v24, 0.0  ;;  %v71_v36 = vmul.f32 %v66_v25, %v66_v25  ;;  %v88_v38 = vadd.f32 %v165_v4, %v82_v30 }
  0x13   : > { %v72_v28 = vsel %vm56_vm1, %v67_v23, 0.0  ;;  %v74_v37 = vsel %vm56_vm1, %v69_v27, 0.0  ;;  %v81_v39 = vmul.f32 %v52_v19, %v52_v19  ;;  %v84_v40 = vsel %vm56_vm1, %v79_v29, 0.0 }
  0x14   : > { %v87_v35 = vadd.f32 %v169_v5, %v72_v28  ;;  %v75_v42 = vsel %vm56_vm1, %v70_v31, 0.0  ;;  %v90_v43 = vadd.f32 %v88_v38, %v83_v34  ;;  %v85_v44 = vsel %vm56_vm1, %v80_v33, 0.0 }
  0x15   : > { %v76_v46 = vsel %vm61_vm2, %v71_v36, 0.0  ;;  %v86_v48 = vsel %vm61_vm2, %v81_v39, 0.0 }
  0x16   : > { %v89_v41 = vadd.f32 %v87_v35, %v73_v32  ;;  %v92_v47 = vadd.f32 %v90_v43, %v84_v40 }
  0x18   : > { %v91_v45 = vadd.f32 %v89_v41, %v74_v37  ;;  %v94_v50 = vadd.f32 %v92_v47, %v85_v44 }
  0x1a   : > { %v93_v49 = vadd.f32 %v91_v45, %v75_v42  ;;  %v96_v52 = vadd.f32 %v94_v50, %v86_v48   ;;  %31 = sbr.rel (!%p29_p0) target bundleno = 7 (0x7), region = 45 }
  0x1c   : > { %v95_v51 = vadd.f32 %v93_v49, %v76_v46   ;;  %v247_v4 = vmov %v96_v52  ;;  %98 = vst [vmem:[%s246_s3] sm:$0xff] (%p29_p0), %v96_v52 }
  0x1e   : > { %v248_v5 = vmov %v95_v51  ;;  %97 = vst [vmem:[%s245_s2] sm:$0xff] (%p29_p0), %v95_v51 }

</bundles_post_ra>
